<compile_context>
chip_gen: v7x
topology: tpu7x:2x2x1
jax: 0.10.0
libtpu: 0.0.40
codegen_flags: <defaults>
</compile_context>

<pallas_src>
import jax
import jax.numpy as jnp
from jax.experimental import pallas as pl
from jax.experimental.pallas import tpu as pltpu


def _collapse_kernel(x_ref, w_ref, bias_ref, o_ref):
    # x_ref:    (C_in, TN)     pixel tile, pixels on lanes (NCHW-native)
    # w_ref:    (C_out, C_in)  1x1 conv weight with BN scale pre-folded
    # bias_ref: (C_out, 1)     folded BN bias (f32)
    # o_ref:    (C_out, TN)
    acc = jnp.dot(w_ref[...], x_ref[...], preferred_element_type=jnp.float32)
    o_ref[...] = jnp.maximum(acc + bias_ref[...], 0.0).astype(o_ref.dtype)


def _vmem_budget_bytes():
    """3/4 of physical VMEM: ~96 MiB on v5e/v6e (128 MiB), ~48 MiB on v7x (64 MiB)."""
    try:
        phys = int(pltpu.get_tpu_info().vmem_capacity_bytes)
    except Exception:
        phys = 64 * 1024 * 1024  # conservative fallback (v7x per-core size)
    return (phys * 3) // 4


@jax.jit
def conv2d_collapse(voxel_features, weight, gamma, beta, run_mean, run_var,
                    eps=1e-5):
    """voxel_features: (B, C, Z, Y, X).  Returns (B, C, Y, X) (NCHW)."""
    B, C, Z, Y, X = voxel_features.shape
    c_in, c_out = C * Z, C
    n_pix = Y * X

    # (B, C, Z, Y, X) -> (B, C*Z, Y*X): contiguous merge, no data movement.
    x = voxel_features.reshape(B, c_in, n_pix)

    # torch Conv2d weight (C_out, C_in, 1, 1) -> (C_out, C_in); fold BN scale
    # into the weight rows so the kernel epilogue is only `+ bias; relu`.
    w = weight.reshape(c_out, c_in).astype(jnp.float32)
    inv_std = 1.0 / jnp.sqrt(run_var.astype(jnp.float32) + eps)
    scale = gamma.astype(jnp.float32) * inv_std
    w_scaled = (w * scale[:, None]).astype(x.dtype)
    bias = (beta.astype(jnp.float32)
            - run_mean.astype(jnp.float32) * scale).reshape(c_out, 1)

    itemsize = jnp.dtype(x.dtype).itemsize

    # ---- Tile sizing from the per-generation VMEM budget (trace-time ints) ----
    vmem_limit = _vmem_budget_bytes()
    weight_resident = 2 * (c_out * c_in * itemsize + c_out * 4)   # dbl-buffered w + bias
    headroom = 4 * 1024 * 1024                                    # Mosaic scratch / sems
    budget = max(vmem_limit - weight_resident - headroom,
                 2 * (c_in + c_out) * itemsize * 512)
    bytes_per_pix_per_buf = (c_in + c_out) * itemsize
    tn_max = max(budget // (2 * bytes_per_pix_per_buf), 512)

    if n_pix <= tn_max:
        tn = n_pix                               # whole BEV row per step
    else:
        tn = min((tn_max // 512) * 512, n_pix)   # lane-dense multiple of 512

    n_tiles = -(-n_pix // tn)
    # Keep >= 2 total grid steps so both v7x TensorCores get work when B == 1.
    if B * n_tiles < 2 and n_pix > 512:
        half = -(-n_pix // 2)
        tn = min(tn, -(-half // 512) * 512)
        n_tiles = -(-n_pix // tn)

    # Optional pipeline tweaks (only where they can actually help; demo-size
    # shapes fall through to the default double-buffered path).
    step_bytes = (c_in + c_out) * tn * itemsize
    act_kw, out_kw, w_kw = {}, {}, {}
    if n_tiles >= 3 and step_bytes <= (1 << 20):
        act_kw = dict(pipeline_mode=pl.Buffered(3))   # hide DMA issue latency
        out_kw = dict(pipeline_mode=pl.Buffered(3))
    if c_out * c_in * itemsize > (1 << 20):
        w_kw = dict(pipeline_mode=pl.Buffered(1))     # grid-invariant: one copy

    grid = (B, n_tiles)

    cost = pl.CostEstimate(
        flops=2 * B * n_pix * c_in * c_out,
        transcendentals=0,
        bytes_accessed=(itemsize * B * n_pix * (c_in + c_out)
                        + itemsize * c_in * c_out + 4 * c_out),
    )

    out = pl.pallas_call(
        _collapse_kernel,
        out_shape=jax.ShapeDtypeStruct((B, c_out, n_pix), voxel_features.dtype),
        grid_spec=pltpu.PrefetchScalarGridSpec(
            num_scalar_prefetch=0,
            grid=grid,
            in_specs=[
                # batch dim squeezed; (C_in, TN) tile of the activations
                pl.BlockSpec((None, c_in, tn), lambda b, j: (b, 0, j), **act_kw),
                # weight + bias resident in VMEM across the whole grid
                pl.BlockSpec((c_out, c_in), lambda b, j: (0, 0), **w_kw),
                pl.BlockSpec((c_out, 1), lambda b, j: (0, 0)),
            ],
            out_specs=pl.BlockSpec((None, c_out, tn), lambda b, j: (b, 0, j), **out_kw),
        ),
        compiler_params=pltpu.CompilerParams(
            dimension_semantics=("parallel", "parallel"),
            vmem_limit_bytes=int(vmem_limit),
        ),
        cost_estimate=cost,
    )(x, w_scaled, bias)

    # (B, C_out, Y*X) -> (B, C_out, Y, X): free contiguous reshape (already NCHW).
    return out.reshape(B, c_out, Y, X)


def _reference(voxel_features, weight, gamma, beta, run_mean, run_var, eps=1e-5):
    B, C, Z, Y, X = voxel_features.shape
    bev = voxel_features.reshape(B, C * Z, Y, X)
    w = weight.reshape(C, C * Z)
    conv = jnp.einsum("bcyx,oc->boyx", bev, w)
    scale = gamma / jnp.sqrt(run_var + eps)
    bias = beta - run_mean * scale
    out = conv * scale[None, :, None, None] + bias[None, :, None, None]
    return jnp.maximum(out, 0.0)


if __name__ == "__main__":
    # Small shapes consistent with the module: grid_size = (X, Y, Z), C = NUM_BEV_FEATURES.
    B, C, Z, Y, X = 2, 4, 4, 16, 16
    c_in, c_out = C * Z, C

    key = jax.random.PRNGKey(0)
    k_vox, k_w, k_g, k_b, k_m, k_v = jax.random.split(key, 6)

    voxel_features = jax.random.normal(k_vox, (B, C, Z, Y, X), dtype=jnp.float32)
    # Conv2d(kernel_size=1, bias=False) weight: (C_out, C_in, 1, 1)
    weight = jax.random.normal(k_w, (c_out, c_in, 1, 1), dtype=jnp.float32) * 0.1
    # BatchNorm2d params / running stats (deterministic synthetic init).
    gamma = 1.0 + 0.1 * jax.random.normal(k_g, (c_out,), dtype=jnp.float32)
    beta = 0.1 * jax.random.normal(k_b, (c_out,), dtype=jnp.float32)
    run_mean = 0.1 * jax.random.normal(k_m, (c_out,), dtype=jnp.float32)
    run_var = jnp.abs(1.0 + 0.1 * jax.random.normal(k_v, (c_out,), dtype=jnp.float32))

    out = conv2d_collapse(voxel_features, weight, gamma, beta, run_mean, run_var)
    out = jax.block_until_ready(out)

    ref = _reference(voxel_features, weight, gamma, beta, run_mean, run_var)
    assert out.shape == (B, C, Y, X), out.shape
    assert jnp.allclose(out, ref, atol=1e-4, rtol=1e-4), float(jnp.max(jnp.abs(out - ref)))

    print("KERNEL_OK")
</pallas_src>

<mosaic_0001>
module attributes {stable_mosaic.version = 11 : i64} {
  func.func @_collapse_kernel(%arg0: i32, %arg1: i32, %arg2: memref<1x16x256xf32, #tpu.memory_space<vmem>>, %arg3: memref<4x16xf32, #tpu.memory_space<vmem>>, %arg4: memref<4x1xf32, #tpu.memory_space<vmem>>, %arg5: memref<1x4x256xf32, #tpu.memory_space<vmem>>) attributes {dimension_semantics = [#tpu.dimension_semantics<parallel>, #tpu.dimension_semantics<parallel>], iteration_bounds = array<i64: 2, 1>, scalar_prefetch = 0 : i64, scratch_operands = 0 : i64, tpu.core_type = #tpu.core_type<tc>, window_params = [{transform_indices = @transform_0, window_bounds = array<i64: 1, 16, 256>}, {pipeline_mode = #tpu.pipeline_mode<synchronous>, transform_indices = @transform_1, window_bounds = array<i64: 4, 16>}, {pipeline_mode = #tpu.pipeline_mode<synchronous>, transform_indices = @transform_2, window_bounds = array<i64: 4, 1>}, {transform_indices = @transform_3, window_bounds = array<i64: 1, 4, 256>}]} {
    %c0 = arith.constant 0 : index
    %c0_0 = arith.constant 0 : index
    %0 = vector.load %arg3[%c0, %c0_0] : memref<4x16xf32, #tpu.memory_space<vmem>>, vector<4x16xf32>
    %c0_1 = arith.constant 0 : index
    %c0_2 = arith.constant 0 : index
    %c0_3 = arith.constant 0 : index
    %1 = vector.load %arg2[%c0_1, %c0_2, %c0_3] : memref<1x16x256xf32, #tpu.memory_space<vmem>>, vector<1x16x256xf32>
    %2 = vector.shape_cast %1 : vector<1x16x256xf32> to vector<16x256xf32>
    %cst = arith.constant dense<0.000000e+00> : vector<4x256xf32>
    %3 = tpu.matmul %0, %2, %cst {dimension_numbers = #tpu.dot_dimension_numbers<[1], [0], [0], [1], [0, 0, 1, 1], [], []>} : vector<4x16xf32>, vector<16x256xf32>, vector<4x256xf32> -> vector<4x256xf32>
    %c0_4 = arith.constant 0 : index
    %c0_5 = arith.constant 0 : index
    %4 = vector.load %arg4[%c0_4, %c0_5] : memref<4x1xf32, #tpu.memory_space<vmem>>, vector<4x1xf32>
    %5 = vector.broadcast %4 : vector<4x1xf32> to vector<4x256xf32>
    %6 = arith.addf %3, %5 : vector<4x256xf32>
    %cst_6 = arith.constant 0.000000e+00 : f32
    %7 = vector.broadcast %cst_6 : f32 to vector<4x256xf32>
    %8 = arith.maximumf %6, %7 : vector<4x256xf32>
    %c0_7 = arith.constant 0 : index
    %c0_8 = arith.constant 0 : index
    %c0_9 = arith.constant 0 : index
    %9 = vector.load %arg5[%c0_7, %c0_8, %c0_9] : memref<1x4x256xf32, #tpu.memory_space<vmem>>, vector<1x4x256xf32>
    %10 = vector.shape_cast %9 : vector<1x4x256xf32> to vector<4x256xf32>
    %11 = vector.shape_cast %8 : vector<4x256xf32> to vector<1x4x256xf32>
    tpu.vector_store %arg5[%c0_7, %c0_8, %c0_9], %11 {strides = array<i32>} : memref<1x4x256xf32, #tpu.memory_space<vmem>>, vector<1x4x256xf32>,
    return
  }
  func.func @transform_0(%arg0: i32, %arg1: i32) -> (i32, i32, i32) {
    %c0_i32 = arith.constant 0 : i32
    %c0_i32_0 = arith.constant 0 : i32
    return %arg0, %c0_i32, %arg1 : i32, i32, i32
  }
  func.func @transform_1(%arg0: i32, %arg1: i32) -> (i32, i32) {
    %c0_i32 = arith.constant 0 : i32
    %c0_i32_0 = arith.constant 0 : i32
    %c0_i32_1 = arith.constant 0 : i32
    return %c0_i32, %c0_i32_0 : i32, i32
  }
  func.func @transform_2(%arg0: i32, %arg1: i32) -> (i32, i32) {
    %c0_i32 = arith.constant 0 : i32
    %c0_i32_0 = arith.constant 0 : i32
    %c0_i32_1 = arith.constant 0 : i32
    return %c0_i32, %c0_i32_0 : i32, i32
  }
  func.func @transform_3(%arg0: i32, %arg1: i32) -> (i32, i32, i32) {
    %c0_i32 = arith.constant 0 : i32
    %c0_i32_0 = arith.constant 0 : i32
    return %arg0, %c0_i32, %arg1 : i32, i32, i32
  }
}

</mosaic_0001>

<bundles_post_ra>
// kernel: conv2d_collapse.1
= control target key start
LH: loop header
LB: loop body
LE: loop exit
PB: predicated region body
PF: predicated region fallthrough
CT: control target
= control target key end

     0   :  { %s481_s12 = smov 0   ;;  %s483_s13 = smov 0   ;;  %s520_s0 = inlined_call_operand.vmem [shape: f32[2,16,256], index: 0, kind: input, shape index: {}]   ;;  %s521_s1 = inlined_call_operand.vmem [shape: f32[4,16], index: 1, kind: input, shape index: {}]   ;;  %s522_s2 = inlined_call_operand.vmem [shape: f32[4,1], index: 2, kind: input, shape index: {}]   ;;  %s523_s3 = inlined_call_operand.vmem [shape: f32[2,4,256], index: 3, kind: output, shape index: {}]  }
   0x1   :  { %s485_s14 = smov 0  }
   0x2 LB: > { %s25_s15 = sadd.s32 1, %s453_s13  ;;  %p394_p0 = scmp.ge.s32.totalorder %s457_s14, 1  ;;  %s457_s14 = sphi %s485_s14, %s13_s14   ;;  %s453_s13 = sphi %s483_s13, %s525_s13   ;;  %s449_s12 = sphi %s481_s12, %s524_s12  }
   0x3   : > { %p27_p1 = scmp.ge.s32.totalorder %s25_s15, 2  ;;  %p158_p2 = scmp.lt.s32.totalorder %s457_s14, 3 }
   0x5   : > { %s527_s15 = smov (%p27_p1, %s25_s15), 0  ;;  %p159_p3 = pnand %p394_p0, %p158_p2 }
   0x6   : > { %p191_p4 = scmp.lt.s32.totalorder (!%p159_p3), %s449_s12, 1  ;;  %v459_v0 = vmov (!%p159_p3), 0.0   ;;  %v460_v1 = vmov (!%p159_p3), 0   ;;  %v215_v2 = vld [vmem:[%s522_s2] sm:$0xf] (!%p159_p3)  ;;  %vm221_vm0 = vcmask (!%p159_p3), 130048  }
   0x7   : > { %162 = sbr.rel (%p159_p3) target bundleno = 244 (0xf4), region = 32  ;;  %289 = vmatprep.mubr.f32.mxu0 (!%p159_p3), %v459_v0  ;;  %434 = vset.pattern.permute.xlu0 (!%p159_p3), %v460_v1  ;;  %v210_v9 = vld [vmem:[%s521_s1] sm:$0xf] (!%p159_p3) }
   0x8   : > { %218 = vperm.xlu0 (!%p159_p3), %434, %v215_v2  }
   0xe   : > { %s529_s12 = smov (!%p191_p4, %s449_s12), 1 }
   0xf   : > { %s402_s18 = sshll.u32 %s529_s12, 5  ;;  %s403_s24 = sshll.u32 %s529_s12, 3 }
  0x10   : > { %s198_s21 = scalar_lea.vmem %s520_s0, %s402_s18  ;;  %s208_s27 = scalar_lea.vmem %s523_s3, %s403_s24 }
  0x11   : > { %v212_v3 = vld [vmem:[%s198_s21 + $0x8] sm:$0xff]  ;;  %v214_v4 = vld [vmem:[%s198_s21 + $0x18] sm:$0xff]  ;;  %v211_v5 = vld [vmem:[%s198_s21] sm:$0xff] }
  0x12   : > { %v404_v6 = vpack.c.bf16 %v214_v4, %v212_v3  ;;  %v213_v7 = vld [vmem:[%s198_s21 + $0x10] sm:$0xff] }
  0x13   : > { %v406_v8 = vpack.c.bf16 %v213_v7, %v211_v5 }
  0x14   : > { %405 = vmatprep.subr.bf16.mxu0 %v404_v6 }
  0x15   : > { %407 = vmatpush1.bf16.msra.mxu0 %v406_v8 }
  0x18   : > { %399 = vmatmul.mubr.msk.f32.vlgmr.msra.gmra.mrb[0].mxu0 %vm221_vm0, %v210_v9 }
  0x87   : > { %v219_v10 = vpop.permute.xlu0 %218 }
  0xeb   : > { %v291_v11 = vpop.f32.mrb[0].mxu0 }
  0xec   : > { %v292_v12 = vadd.f32 %v291_v11, %v219_v10  ;;  %v293_v13 = vpop.f32.mrb[1].mxu0 }
  0xed   : > { %v294_v14 = vadd.f32 %v293_v13, %v219_v10 }
  0xee   : > { %v296_v15 = vmax.f32 %v292_v12, 0.0 }
  0xef   : > { %v297_v16 = vmax.f32 %v294_v14, 0.0 }
  0xf1   : > { %v300_v17 = vcombine.low %v296_v15, %v297_v16 }
  0xf3   : > { %302 = vst [vmem:[%s208_s27] sm:$0xff] %v300_v17 }
  0xf4 PF: > { %s13_s14 = sadd.s32 1, %s457_s14   ;;  %s524_s12 = smov %s453_s13 }
  0xf5   : > { %p10_p5 = scmp.ge.s32.totalorder %s13_s14, 4   ;;  %s525_s13 = smov %s527_s15 }
  0xf7   :  { %12 = sbr.rel (!%p10_p5) target bundleno = 2 (0x2), region = 62 }

</bundles_post_ra>
